<compile_context>
chip_gen: v7x
topology: tpu7x:2x2x1
jax: 0.10.0
libtpu: 0.0.40
codegen_flags: <defaults>
</compile_context>

<pallas_src>
import functools

import jax
import jax.numpy as jnp
from jax.experimental import pallas as pl
from jax.experimental.pallas import tpu as pltpu


def _round8(n):
    return ((n + 7) // 8) * 8


# ---------------------------------------------------------------------------
# fused forward kernel
# ---------------------------------------------------------------------------
def _fused_ae_kernel(x_ref, eps_ref, slab_ref, y_ref, kl_ref, *, T, D, L, H, offs):
    """Full VAE-autoencoder forward:
       encoder MLP -> merged (mu, logvar) head -> reparameterized z + KL ->
       autoregressive tanh-RNN decoder ('output_as_input', feedback folded into W_rec)."""
    f32 = jnp.float32
    B = x_ref.shape[0]

    def blk(name):
        # static slice into the packed parameter slab (all row starts are 8-aligned)
        r0, r, c = offs[name]
        return slab_ref[r0:r0 + r, 0:c]

    x = x_ref[...]                                                   # (B, T*D)

    # ---------------- encoder (tanh MLP on flattened sequence) ----------------
    h1 = jnp.tanh(jnp.dot(x, blk("w1"), preferred_element_type=f32) + blk("b1"))
    h2 = jnp.tanh(jnp.dot(h1, blk("w2"), preferred_element_type=f32) + blk("b2"))

    # ---------------- LatentDistribution: merged mu/logvar head ----------------
    # NOTE: mu/lv split at lane L (<128) -> cheap in-tile select; revisit layout if L grows.
    ml = jnp.dot(h2, blk("w_ml"), preferred_element_type=f32) + blk("b_ml")   # (B, 2L)
    mu = ml[:, :L]
    lv = ml[:, L:]
    e = jnp.exp(0.5 * lv)                                            # reused: e*e == exp(lv)
    z = mu + e * eps_ref[...]                                        # reparameterization

    # KL(q(z|x) || N(0,I)) = -0.5 * sum(1 + logvar - mu^2 - exp(logvar))
    kl_ref[...] = -0.5 * jnp.sum(1.0 + lv - mu * mu - e * e,
                                 axis=(0, 1), keepdims=True)

    # ---------------- Decoder_output_as_input (feedback folded into W_rec) ----------------
    # h0   = tanh(z @ Wz + bz)
    # h_1  = tanh(x_last @ Win + h0 @ Wh + bh)
    # h_t  = tanh(h_{t-1} @ W_rec + b_rec)        with  W_rec = Wh + Wout@Win, b_rec = bh + bout@Win
    # y_t  = h_{t+1} @ Wout + bout                (off the serial chain; static slice store)
    h0 = jnp.tanh(jnp.dot(z, blk("wz"), preferred_element_type=f32) + blk("bz"))
    x_last = x[:, (T - 1) * D:]                                       # (B, D) static slice
    h = jnp.tanh(jnp.dot(x_last, blk("win"), preferred_element_type=f32)
                 + jnp.dot(h0, blk("wh"), preferred_element_type=f32)
                 + blk("bh"))

    # hoist weight loads / bias broadcasts out of the unrolled loop
    w_rec = blk("w_rec")                                              # (H, H)
    wout = blk("wout")                                                # (H, D)
    b_rec = jnp.broadcast_to(blk("b_rec"), (B, H))
    bout = jnp.broadcast_to(blk("bout"), (B, D))

    y_ref[:, 0:D] = (jnp.dot(h, wout, preferred_element_type=f32) + bout).astype(y_ref.dtype)
    for t in range(1, T):                                             # fully unrolled (T static)
        h = jnp.tanh(jnp.dot(h, w_rec, preferred_element_type=f32) + b_rec)
        y_ref[:, t * D:(t + 1) * D] = (
            jnp.dot(h, wout, preferred_element_type=f32) + bout).astype(y_ref.dtype)


# ---------------------------------------------------------------------------
# parameter init (deterministic, PyTorch Linear-style U(-1/sqrt(fan_in), +))
# ---------------------------------------------------------------------------
def init_params(key, seq_len, in_dim, hidden_dim, latent_dim):
    def lin(k, fan_in, fan_out):
        bound = 1.0 / jnp.sqrt(jnp.float32(fan_in))
        kw, kb = jax.random.split(k)
        w = jax.random.uniform(kw, (fan_in, fan_out), jnp.float32, -bound, bound)
        b = jax.random.uniform(kb, (1, fan_out), jnp.float32, -bound, bound)
        return w, b

    ks = jax.random.split(key, 8)
    p = {}
    p["enc_w1"], p["enc_b1"] = lin(ks[0], seq_len * in_dim, hidden_dim)
    p["enc_w2"], p["enc_b2"] = lin(ks[1], hidden_dim, hidden_dim)
    p["w_mu"], p["b_mu"] = lin(ks[2], hidden_dim, latent_dim)
    p["w_lv"], p["b_lv"] = lin(ks[3], hidden_dim, latent_dim)
    p["dec_wz"], p["dec_bz"] = lin(ks[4], latent_dim, hidden_dim)
    p["dec_win"], _ = lin(ks[5], in_dim, hidden_dim)
    # recurrent bias uses the hidden-layer fan-in (PyTorch-RNN style)
    p["dec_wh"], p["dec_bh"] = lin(ks[6], hidden_dim, hidden_dim)
    p["dec_wout"], p["dec_bout"] = lin(ks[7], hidden_dim, in_dim)
    return p


def prepare_params(params, seq_len, in_dim):
    """One-time weight fusion + packing of ALL parameters into a single f32 slab.

    Each block is padded to an 8-row-aligned group and to the common column width, so the
    kernel reads it back with clean static slices.  Also folds the decoder output-feedback
    into the recurrent weight (W_rec, b_rec)."""
    T, D = seq_len, in_dim
    H = params["enc_w2"].shape[0]

    w_ml = jnp.concatenate([params["w_mu"], params["w_lv"]], axis=1)      # (H, 2L)
    b_ml = jnp.concatenate([params["b_mu"], params["b_lv"]], axis=1)      # (1, 2L)
    w_rec = params["dec_wh"] + params["dec_wout"] @ params["dec_win"]     # (H, H)
    b_rec = params["dec_bh"] + params["dec_bout"] @ params["dec_win"]     # (1, H)

    blocks = [
        ("w1", params["enc_w1"]),      # (T*D, H)
        ("w2", params["enc_w2"]),      # (H, H)
        ("w_ml", w_ml),                # (H, 2L)
        ("wz", params["dec_wz"]),      # (L, H)
        ("win", params["dec_win"]),    # (D, H)
        ("wh", params["dec_wh"]),      # (H, H)
        ("w_rec", w_rec),              # (H, H)
        ("wout", params["dec_wout"]),  # (H, D)
        ("b1", params["enc_b1"]), ("b2", params["enc_b2"]), ("b_ml", b_ml),
        ("bz", params["dec_bz"]), ("bh", params["dec_bh"]),
        ("b_rec", b_rec), ("bout", params["dec_bout"]),
    ]
    W = max(m.shape[1] for _, m in blocks)

    offs = {}
    rows = []
    off = 0
    for name, m in blocks:
        r, c = m.shape
        pr = _round8(r)
        rows.append(jnp.pad(m.astype(jnp.float32), ((0, pr - r), (0, W - c))))
        offs[name] = (off, r, c)
        off += pr
    slab = jnp.concatenate(rows, axis=0)                              # one (rows, W) f32 slab
    L = params["w_mu"].shape[1]
    return slab, offs, dict(T=T, D=D, L=L, H=H)


# ---------------------------------------------------------------------------
# Autoencoder.forward  (encoder_type='VAE', decoder_type='output_as_input')
# ---------------------------------------------------------------------------
def autoencoder_forward(x, slab, eps, *, offs, T, D, L, H):
    B = x.shape[0]
    x_flat = x.reshape(B, T * D)                       # free reshape, no transpose anywhere

    y_flat, kl = pl.pallas_call(
        functools.partial(_fused_ae_kernel, T=T, D=D, L=L, H=H, offs=offs),
        out_shape=(jax.ShapeDtypeStruct((B, T * D), jnp.float32),
                   jax.ShapeDtypeStruct((1, 1), jnp.float32)),
        in_specs=[pl.BlockSpec(memory_space=pltpu.MemorySpace.VMEM)] * 3,
        out_specs=(pl.BlockSpec(memory_space=pltpu.MemorySpace.VMEM),
                   pl.BlockSpec(memory_space=pltpu.MemorySpace.VMEM)),
    )(x_flat, eps, slab)

    y = y_flat.reshape(B, T, D)                        # row-major compatible -> free
    # use_integrator is False by default -> no integrate() call.
    return y, kl[0, 0]


# ---------------------------------------------------------------------------
# main
# ---------------------------------------------------------------------------
if __name__ == "__main__":
    B, T, D = 2, 8, 4          # batch, seq_len, feature dim
    HIDDEN, LATENT = 32, 8

    key = jax.random.PRNGKey(0)
    kx, keps, kp = jax.random.split(key, 3)
    x = jax.random.normal(kx, (B, T, D), jnp.float32)
    eps = jax.random.normal(keps, (B, LATENT), jnp.float32)   # deterministic VAE noise
    params = init_params(kp, T, D, HIDDEN, LATENT)
    slab, offs, dims = prepare_params(params, T, D)           # one-time weight fusion + packing

    fwd = jax.jit(functools.partial(autoencoder_forward, offs=offs, **dims))
    y, kl = fwd(x, slab, eps)
    jax.block_until_ready((y, kl))

    assert y.shape == (B, T, D) and y.dtype == jnp.float32
    assert kl.shape == () and bool(jnp.isfinite(kl))
    print("KERNEL_OK")
</pallas_src>

<mosaic_0001>
module attributes {stable_mosaic.version = 11 : i64} {
  func.func @_fused_ae_kernel(%arg0: memref<2x32xf32, #tpu.memory_space<vmem>>, %arg1: memref<2x8xf32, #tpu.memory_space<vmem>>, %arg2: memref<264x32xf32, #tpu.memory_space<vmem>>, %arg3: memref<2x32xf32, #tpu.memory_space<vmem>>, %arg4: memref<1x1xf32, #tpu.memory_space<vmem>>) attributes {dimension_semantics = [], scalar_prefetch = 0 : i64, scratch_operands = 0 : i64, tpu.core_type = #tpu.core_type<tc>} {
    %c0 = arith.constant 0 : index
    %c0_0 = arith.constant 0 : index
    %0 = vector.load %arg0[%c0, %c0_0] : memref<2x32xf32, #tpu.memory_space<vmem>>, vector<2x32xf32>
    %c0_1 = arith.constant 0 : index
    %c0_2 = arith.constant 0 : index
    %1 = vector.load %arg2[%c0_1, %c0_2] : memref<264x32xf32, #tpu.memory_space<vmem>>, vector<32x32xf32>
    %cst = arith.constant dense<0.000000e+00> : vector<2x32xf32>
    %2 = tpu.matmul %0, %1, %cst {dimension_numbers = #tpu.dot_dimension_numbers<[1], [0], [0], [1], [0, 0, 1, 1], [], []>} : vector<2x32xf32>, vector<32x32xf32>, vector<2x32xf32> -> vector<2x32xf32>
    %c208 = arith.constant 208 : index
    %c0_3 = arith.constant 0 : index
    %3 = vector.load %arg2[%c208, %c0_3] : memref<264x32xf32, #tpu.memory_space<vmem>>, vector<1x32xf32>
    %4 = vector.broadcast %3 : vector<1x32xf32> to vector<2x32xf32>
    %5 = arith.addf %2, %4 : vector<2x32xf32>
    %6 = math.tanh %5 : vector<2x32xf32>
    %c32 = arith.constant 32 : index
    %c0_4 = arith.constant 0 : index
    %7 = vector.load %arg2[%c32, %c0_4] : memref<264x32xf32, #tpu.memory_space<vmem>>, vector<32x32xf32>
    %cst_5 = arith.constant dense<0.000000e+00> : vector<2x32xf32>
    %8 = tpu.matmul %6, %7, %cst_5 {dimension_numbers = #tpu.dot_dimension_numbers<[1], [0], [0], [1], [0, 0, 1, 1], [], []>} : vector<2x32xf32>, vector<32x32xf32>, vector<2x32xf32> -> vector<2x32xf32>
    %c216 = arith.constant 216 : index
    %c0_6 = arith.constant 0 : index
    %9 = vector.load %arg2[%c216, %c0_6] : memref<264x32xf32, #tpu.memory_space<vmem>>, vector<1x32xf32>
    %10 = vector.broadcast %9 : vector<1x32xf32> to vector<2x32xf32>
    %11 = arith.addf %8, %10 : vector<2x32xf32>
    %12 = math.tanh %11 : vector<2x32xf32>
    %c64 = arith.constant 64 : index
    %c0_7 = arith.constant 0 : index
    %13 = vector.load %arg2[%c64, %c0_7] : memref<264x32xf32, #tpu.memory_space<vmem>>, vector<32x16xf32>
    %cst_8 = arith.constant dense<0.000000e+00> : vector<2x16xf32>
    %14 = tpu.matmul %12, %13, %cst_8 {dimension_numbers = #tpu.dot_dimension_numbers<[1], [0], [0], [1], [0, 0, 1, 1], [], []>} : vector<2x32xf32>, vector<32x16xf32>, vector<2x16xf32> -> vector<2x16xf32>
    %c224 = arith.constant 224 : index
    %c0_9 = arith.constant 0 : index
    %15 = vector.load %arg2[%c224, %c0_9] : memref<264x32xf32, #tpu.memory_space<vmem>>, vector<1x16xf32>
    %16 = vector.broadcast %15 : vector<1x16xf32> to vector<2x16xf32>
    %17 = arith.addf %14, %16 : vector<2x16xf32>
    %18 = vector.extract_strided_slice %17 {offsets = [0, 0], sizes = [2, 8], strides = [1, 1]} : vector<2x16xf32> to vector<2x8xf32>
    %19 = vector.extract_strided_slice %17 {offsets = [0, 8], sizes = [2, 8], strides = [1, 1]} : vector<2x16xf32> to vector<2x8xf32>
    %cst_10 = arith.constant 5.000000e-01 : f32
    %20 = vector.broadcast %cst_10 : f32 to vector<2x8xf32>
    %21 = arith.mulf %20, %19 : vector<2x8xf32>
    %22 = math.exp %21 : vector<2x8xf32>
    %c0_11 = arith.constant 0 : index
    %c0_12 = arith.constant 0 : index
    %23 = vector.load %arg1[%c0_11, %c0_12] : memref<2x8xf32, #tpu.memory_space<vmem>>, vector<2x8xf32>
    %24 = arith.mulf %22, %23 : vector<2x8xf32>
    %25 = arith.addf %18, %24 : vector<2x8xf32>
    %cst_13 = arith.constant 1.000000e+00 : f32
    %26 = vector.broadcast %cst_13 : f32 to vector<2x8xf32>
    %27 = arith.addf %26, %19 : vector<2x8xf32>
    %28 = arith.mulf %18, %18 : vector<2x8xf32>
    %29 = arith.subf %27, %28 : vector<2x8xf32>
    %30 = arith.mulf %22, %22 : vector<2x8xf32>
    %31 = arith.subf %29, %30 : vector<2x8xf32>
    %32 = vector.shape_cast %31 : vector<2x8xf32> to vector<1x2x8xf32>
    %cst_14 = arith.constant dense<0.000000e+00> : vector<1xf32>
    %33 = vector.multi_reduction <add>, %32, %cst_14 [1, 2] : vector<1x2x8xf32> to vector<1xf32>
    %34 = vector.shape_cast %33 : vector<1xf32> to vector<1x1x1xf32>
    %35 = vector.extract %34[0, 0, 0] : f32 from vector<1x1x1xf32>
    %36 = vector.broadcast %35 : f32 to vector<1x1xf32>
    %cst_15 = arith.constant -5.000000e-01 : f32
    %37 = vector.broadcast %cst_15 : f32 to vector<1x1xf32>
    %38 = arith.mulf %37, %36 : vector<1x1xf32>
    %c0_16 = arith.constant 0 : index
    %c0_17 = arith.constant 0 : index
    %39 = vector.load %arg4[%c0_16, %c0_17] : memref<1x1xf32, #tpu.memory_space<vmem>>, vector<1x1xf32>
    tpu.vector_store %arg4[%c0_16, %c0_17], %38 {strides = array<i32>} : memref<1x1xf32, #tpu.memory_space<vmem>>, vector<1x1xf32>,
    %c96 = arith.constant 96 : index
    %c0_18 = arith.constant 0 : index
    %40 = vector.load %arg2[%c96, %c0_18] : memref<264x32xf32, #tpu.memory_space<vmem>>, vector<8x32xf32>
    %cst_19 = arith.constant dense<0.000000e+00> : vector<2x32xf32>
    %41 = tpu.matmul %25, %40, %cst_19 {dimension_numbers = #tpu.dot_dimension_numbers<[1], [0], [0], [1], [0, 0, 1, 1], [], []>} : vector<2x8xf32>, vector<8x32xf32>, vector<2x32xf32> -> vector<2x32xf32>
    %c232 = arith.constant 232 : index
    %c0_20 = arith.constant 0 : index
    %42 = vector.load %arg2[%c232, %c0_20] : memref<264x32xf32, #tpu.memory_space<vmem>>, vector<1x32xf32>
    %43 = vector.broadcast %42 : vector<1x32xf32> to vector<2x32xf32>
    %44 = arith.addf %41, %43 : vector<2x32xf32>
    %45 = math.tanh %44 : vector<2x32xf32>
    %46 = vector.extract_strided_slice %0 {offsets = [0, 28], sizes = [2, 4], strides = [1, 1]} : vector<2x32xf32> to vector<2x4xf32>
    %c104 = arith.constant 104 : index
    %c0_21 = arith.constant 0 : index
    %47 = vector.load %arg2[%c104, %c0_21] : memref<264x32xf32, #tpu.memory_space<vmem>>, vector<4x32xf32>
    %cst_22 = arith.constant dense<0.000000e+00> : vector<2x32xf32>
    %48 = tpu.matmul %46, %47, %cst_22 {dimension_numbers = #tpu.dot_dimension_numbers<[1], [0], [0], [1], [0, 0, 1, 1], [], []>} : vector<2x4xf32>, vector<4x32xf32>, vector<2x32xf32> -> vector<2x32xf32>
    %c112 = arith.constant 112 : index
    %c0_23 = arith.constant 0 : index
    %49 = vector.load %arg2[%c112, %c0_23] : memref<264x32xf32, #tpu.memory_space<vmem>>, vector<32x32xf32>
    %cst_24 = arith.constant dense<0.000000e+00> : vector<2x32xf32>
    %50 = tpu.matmul %45, %49, %cst_24 {dimension_numbers = #tpu.dot_dimension_numbers<[1], [0], [0], [1], [0, 0, 1, 1], [], []>} : vector<2x32xf32>, vector<32x32xf32>, vector<2x32xf32> -> vector<2x32xf32>
    %51 = arith.addf %48, %50 : vector<2x32xf32>
    %c240 = arith.constant 240 : index
    %c0_25 = arith.constant 0 : index
    %52 = vector.load %arg2[%c240, %c0_25] : memref<264x32xf32, #tpu.memory_space<vmem>>, vector<1x32xf32>
    %53 = vector.broadcast %52 : vector<1x32xf32> to vector<2x32xf32>
    %54 = arith.addf %51, %53 : vector<2x32xf32>
    %55 = math.tanh %54 : vector<2x32xf32>
    %c144 = arith.constant 144 : index
    %c0_26 = arith.constant 0 : index
    %56 = vector.load %arg2[%c144, %c0_26] : memref<264x32xf32, #tpu.memory_space<vmem>>, vector<32x32xf32>
    %c176 = arith.constant 176 : index
    %c0_27 = arith.constant 0 : index
    %57 = vector.load %arg2[%c176, %c0_27] : memref<264x32xf32, #tpu.memory_space<vmem>>, vector<32x4xf32>
    %c248 = arith.constant 248 : index
    %c0_28 = arith.constant 0 : index
    %58 = vector.load %arg2[%c248, %c0_28] : memref<264x32xf32, #tpu.memory_space<vmem>>, vector<1x32xf32>
    %59 = vector.shape_cast %58 : vector<1x32xf32> to vector<1x32xf32>
    %60 = vector.broadcast %59 : vector<1x32xf32> to vector<2x32xf32>
    %c256 = arith.constant 256 : index
    %c0_29 = arith.constant 0 : index
    %61 = vector.load %arg2[%c256, %c0_29] : memref<264x32xf32, #tpu.memory_space<vmem>>, vector<1x4xf32>
    %62 = vector.shape_cast %61 : vector<1x4xf32> to vector<1x4xf32>
    %63 = vector.broadcast %62 : vector<1x4xf32> to vector<2x4xf32>
    %cst_30 = arith.constant dense<0.000000e+00> : vector<2x4xf32>
    %64 = tpu.matmul %55, %57, %cst_30 {dimension_numbers = #tpu.dot_dimension_numbers<[1], [0], [0], [1], [0, 0, 1, 1], [], []>} : vector<2x32xf32>, vector<32x4xf32>, vector<2x4xf32> -> vector<2x4xf32>
    %65 = arith.addf %64, %63 : vector<2x4xf32>
    %c0_31 = arith.constant 0 : index
    %c0_32 = arith.constant 0 : index
    %66 = vector.load %arg3[%c0_31, %c0_32] : memref<2x32xf32, #tpu.memory_space<vmem>>, vector<2x4xf32>
    tpu.vector_store %arg3[%c0_31, %c0_32], %65 {strides = array<i32>} : memref<2x32xf32, #tpu.memory_space<vmem>>, vector<2x4xf32>,
    %cst_33 = arith.constant dense<0.000000e+00> : vector<2x32xf32>
    %67 = tpu.matmul %55, %56, %cst_33 {dimension_numbers = #tpu.dot_dimension_numbers<[1], [0], [0], [1], [0, 0, 1, 1], [], []>} : vector<2x32xf32>, vector<32x32xf32>, vector<2x32xf32> -> vector<2x32xf32>
    %68 = arith.addf %67, %60 : vector<2x32xf32>
    %69 = math.tanh %68 : vector<2x32xf32>
    %cst_34 = arith.constant dense<0.000000e+00> : vector<2x4xf32>
    %70 = tpu.matmul %69, %57, %cst_34 {dimension_numbers = #tpu.dot_dimension_numbers<[1], [0], [0], [1], [0, 0, 1, 1], [], []>} : vector<2x32xf32>, vector<32x4xf32>, vector<2x4xf32> -> vector<2x4xf32>
    %71 = arith.addf %70, %63 : vector<2x4xf32>
    %c0_35 = arith.constant 0 : index
    %c4 = arith.constant 4 : index
    %72 = vector.load %arg3[%c0_35, %c4] : memref<2x32xf32, #tpu.memory_space<vmem>>, vector<2x4xf32>
    tpu.vector_store %arg3[%c0_35, %c4], %71 {strides = array<i32>} : memref<2x32xf32, #tpu.memory_space<vmem>>, vector<2x4xf32>,
    %cst_36 = arith.constant dense<0.000000e+00> : vector<2x32xf32>
    %73 = tpu.matmul %69, %56, %cst_36 {dimension_numbers = #tpu.dot_dimension_numbers<[1], [0], [0], [1], [0, 0, 1, 1], [], []>} : vector<2x32xf32>, vector<32x32xf32>, vector<2x32xf32> -> vector<2x32xf32>
    %74 = arith.addf %73, %60 : vector<2x32xf32>
    %75 = math.tanh %74 : vector<2x32xf32>
    %cst_37 = arith.constant dense<0.000000e+00> : vector<2x4xf32>
    %76 = tpu.matmul %75, %57, %cst_37 {dimension_numbers = #tpu.dot_dimension_numbers<[1], [0], [0], [1], [0, 0, 1, 1], [], []>} : vector<2x32xf32>, vector<32x4xf32>, vector<2x4xf32> -> vector<2x4xf32>
    %77 = arith.addf %76, %63 : vector<2x4xf32>
    %c0_38 = arith.constant 0 : index
    %c8 = arith.constant 8 : index
    %78 = vector.load %arg3[%c0_38, %c8] : memref<2x32xf32, #tpu.memory_space<vmem>>, vector<2x4xf32>
    tpu.vector_store %arg3[%c0_38, %c8], %77 {strides = array<i32>} : memref<2x32xf32, #tpu.memory_space<vmem>>, vector<2x4xf32>,
    %cst_39 = arith.constant dense<0.000000e+00> : vector<2x32xf32>
    %79 = tpu.matmul %75, %56, %cst_39 {dimension_numbers = #tpu.dot_dimension_numbers<[1], [0], [0], [1], [0, 0, 1, 1], [], []>} : vector<2x32xf32>, vector<32x32xf32>, vector<2x32xf32> -> vector<2x32xf32>
    %80 = arith.addf %79, %60 : vector<2x32xf32>
    %81 = math.tanh %80 : vector<2x32xf32>
    %cst_40 = arith.constant dense<0.000000e+00> : vector<2x4xf32>
    %82 = tpu.matmul %81, %57, %cst_40 {dimension_numbers = #tpu.dot_dimension_numbers<[1], [0], [0], [1], [0, 0, 1, 1], [], []>} : vector<2x32xf32>, vector<32x4xf32>, vector<2x4xf32> -> vector<2x4xf32>
    %83 = arith.addf %82, %63 : vector<2x4xf32>
    %c0_41 = arith.constant 0 : index
    %c12 = arith.constant 12 : index
    %84 = vector.load %arg3[%c0_41, %c12] : memref<2x32xf32, #tpu.memory_space<vmem>>, vector<2x4xf32>
    tpu.vector_store %arg3[%c0_41, %c12], %83 {strides = array<i32>} : memref<2x32xf32, #tpu.memory_space<vmem>>, vector<2x4xf32>,
    %cst_42 = arith.constant dense<0.000000e+00> : vector<2x32xf32>
    %85 = tpu.matmul %81, %56, %cst_42 {dimension_numbers = #tpu.dot_dimension_numbers<[1], [0], [0], [1], [0, 0, 1, 1], [], []>} : vector<2x32xf32>, vector<32x32xf32>, vector<2x32xf32> -> vector<2x32xf32>
    %86 = arith.addf %85, %60 : vector<2x32xf32>
    %87 = math.tanh %86 : vector<2x32xf32>
    %cst_43 = arith.constant dense<0.000000e+00> : vector<2x4xf32>
    %88 = tpu.matmul %87, %57, %cst_43 {dimension_numbers = #tpu.dot_dimension_numbers<[1], [0], [0], [1], [0, 0, 1, 1], [], []>} : vector<2x32xf32>, vector<32x4xf32>, vector<2x4xf32> -> vector<2x4xf32>
    %89 = arith.addf %88, %63 : vector<2x4xf32>
    %c0_44 = arith.constant 0 : index
    %c16 = arith.constant 16 : index
    %90 = vector.load %arg3[%c0_44, %c16] : memref<2x32xf32, #tpu.memory_space<vmem>>, vector<2x4xf32>
    tpu.vector_store %arg3[%c0_44, %c16], %89 {strides = array<i32>} : memref<2x32xf32, #tpu.memory_space<vmem>>, vector<2x4xf32>,
    %cst_45 = arith.constant dense<0.000000e+00> : vector<2x32xf32>
    %91 = tpu.matmul %87, %56, %cst_45 {dimension_numbers = #tpu.dot_dimension_numbers<[1], [0], [0], [1], [0, 0, 1, 1], [], []>} : vector<2x32xf32>, vector<32x32xf32>, vector<2x32xf32> -> vector<2x32xf32>
    %92 = arith.addf %91, %60 : vector<2x32xf32>
    %93 = math.tanh %92 : vector<2x32xf32>
    %cst_46 = arith.constant dense<0.000000e+00> : vector<2x4xf32>
    %94 = tpu.matmul %93, %57, %cst_46 {dimension_numbers = #tpu.dot_dimension_numbers<[1], [0], [0], [1], [0, 0, 1, 1], [], []>} : vector<2x32xf32>, vector<32x4xf32>, vector<2x4xf32> -> vector<2x4xf32>
    %95 = arith.addf %94, %63 : vector<2x4xf32>
    %c0_47 = arith.constant 0 : index
    %c20 = arith.constant 20 : index
    %96 = vector.load %arg3[%c0_47, %c20] : memref<2x32xf32, #tpu.memory_space<vmem>>, vector<2x4xf32>
    tpu.vector_store %arg3[%c0_47, %c20], %95 {strides = array<i32>} : memref<2x32xf32, #tpu.memory_space<vmem>>, vector<2x4xf32>,
    %cst_48 = arith.constant dense<0.000000e+00> : vector<2x32xf32>
    %97 = tpu.matmul %93, %56, %cst_48 {dimension_numbers = #tpu.dot_dimension_numbers<[1], [0], [0], [1], [0, 0, 1, 1], [], []>} : vector<2x32xf32>, vector<32x32xf32>, vector<2x32xf32> -> vector<2x32xf32>
    %98 = arith.addf %97, %60 : vector<2x32xf32>
    %99 = math.tanh %98 : vector<2x32xf32>
    %cst_49 = arith.constant dense<0.000000e+00> : vector<2x4xf32>
    %100 = tpu.matmul %99, %57, %cst_49 {dimension_numbers = #tpu.dot_dimension_numbers<[1], [0], [0], [1], [0, 0, 1, 1], [], []>} : vector<2x32xf32>, vector<32x4xf32>, vector<2x4xf32> -> vector<2x4xf32>
    %101 = arith.addf %100, %63 : vector<2x4xf32>
    %c0_50 = arith.constant 0 : index
    %c24 = arith.constant 24 : index
    %102 = vector.load %arg3[%c0_50, %c24] : memref<2x32xf32, #tpu.memory_space<vmem>>, vector<2x4xf32>
    tpu.vector_store %arg3[%c0_50, %c24], %101 {strides = array<i32>} : memref<2x32xf32, #tpu.memory_space<vmem>>, vector<2x4xf32>,
    %cst_51 = arith.constant dense<0.000000e+00> : vector<2x32xf32>
    %103 = tpu.matmul %99, %56, %cst_51 {dimension_numbers = #tpu.dot_dimension_numbers<[1], [0], [0], [1], [0, 0, 1, 1], [], []>} : vector<2x32xf32>, vector<32x32xf32>, vector<2x32xf32> -> vector<2x32xf32>
    %104 = arith.addf %103, %60 : vector<2x32xf32>
    %105 = math.tanh %104 : vector<2x32xf32>
    %cst_52 = arith.constant dense<0.000000e+00> : vector<2x4xf32>
    %106 = tpu.matmul %105, %57, %cst_52 {dimension_numbers = #tpu.dot_dimension_numbers<[1], [0], [0], [1], [0, 0, 1, 1], [], []>} : vector<2x32xf32>, vector<32x4xf32>, vector<2x4xf32> -> vector<2x4xf32>
    %107 = arith.addf %106, %63 : vector<2x4xf32>
    %c0_53 = arith.constant 0 : index
    %c28 = arith.constant 28 : index
    %108 = vector.load %arg3[%c0_53, %c28] : memref<2x32xf32, #tpu.memory_space<vmem>>, vector<2x4xf32>
    tpu.vector_store %arg3[%c0_53, %c28], %107 {strides = array<i32>} : memref<2x32xf32, #tpu.memory_space<vmem>>, vector<2x4xf32>,
    return
  }
}

</mosaic_0001>

<bundles_post_ra>
// kernel: autoencoder_forward.1
= control target key start
LH: loop header
LB: loop body
LE: loop exit
PB: predicated region body
PF: predicated region fallthrough
CT: control target
= control target key end

     0   :  { %v2239_v3 = vmov 0.0|0.0   ;;  %vm2240_vm0 = vmmov 0   ;;  %v2241_v6 = vmov 0.0   ;;  %s2579_s0 = inlined_call_operand.vmem [shape: f32[2,32], index: 0, kind: input, shape index: {}]   ;;  %s2580_s1 = inlined_call_operand.vmem [shape: f32[2,8], index: 1, kind: input, shape index: {}]   ;;  %s2581_s2 = inlined_call_operand.vmem [shape: f32[264,32], index: 2, kind: input, shape index: {}]   ;;  %s2582_s3 = inlined_call_operand.vmem [shape: f32[2,32], index: 3, kind: output, shape index: {0}]   ;;  %s2583_s4 = inlined_call_operand.hbm [shape: f32[1,1], index: 4, kind: output, shape index: {1}]  }
   0x1   :  { %v18_v0 = vld [vmem:[%s2581_s2] sm:$0xff]  ;;  %v19_v1 = vld [vmem:[%s2581_s2 + $0x8] sm:$0xff]  ;;  %v20_v2 = vld [vmem:[%s2581_s2 + $0x10] sm:$0xff]  ;;  %2062 = vmatprep.subr.bf16.mxu0 %v2239_v3  ;;  %1851 = vmatprep.mubr.msk.f32.mxu0 %vm2240_vm0, %v2241_v6 }
   0x2   :  { %v2063_v4 = vpack.c.bf16 %v19_v1, %v18_v0  ;;  %v21_v5 = vld [vmem:[%s2581_s2 + $0x18] sm:$0xff]  ;;  %2068 = vmatprep.subr.bf16.mxu1 %v2239_v3  ;;  %1862 = vmatprep.mubr.msk.f32.mxu1 %vm2240_vm0, %v2241_v6 }
   0x3   :  { %10 = vsyncpa [#allocation3], 0  ;;  %v2066_v7 = vpack.c.bf16 %v21_v5, %v20_v2  ;;  %v17_v8 = vld [vmem:[%s2579_s0] sm:$0x3]  ;;  %vm27_vm1 = vcmask 261120   ;;  %v103_v10 = vld [vmem:[%s2581_s2 + $0x28] sm:$0xff] }
   0x4   :  { %2064 = vmatpush3.bf16.msra.mxu0 %v2063_v4  ;;  %v102_v9 = vld [vmem:[%s2581_s2 + $0x20] sm:$0xff]  ;;  %v104_v11 = vld [vmem:[%s2581_s2 + $0x30] sm:$0xff]  ;;  %v105_v13 = vld [vmem:[%s2581_s2 + $0x38] sm:$0xff]  ;;  %s2242_s18 = smov 8   ;;  %s2243_s21 = smov 100   ;;  %vm315_vm2 = vcmask 64512  }
   0x5   :  { %2065 = vmatprep.subr.bf16.mxu0 %v2239_v3  ;;  %v2069_v12 = vpack.c.bf16 %v103_v10, %v102_v9  ;;  %v2072_v14 = vpack.c.bf16 %v105_v13, %v104_v11  ;;  %v1715_v15 = vld [vmem:[%s2581_s2 + $0xd0] ss:$0 sm:$0xff]  ;;  %v185_v20 = vld [vmem:[%s2581_s2 + $0x40] sm:$0xff]  ;;  %v186_v21 = vld [vmem:[%s2581_s2 + $0x48] sm:$0xff]  ;;  %468 = vrot.lane.b32.xlu1 %v17_v8, %s2243_s21  ;;  %s2244_s25 = smov 120   ;;  %vm294_vm3 = vcmask 58368  }
   0x6   :  { %v187_v22 = vld [vmem:[%s2581_s2 + $0x50] sm:$0xff]  ;;  %v2075_v23 = vpack.c.bf16 %v186_v21, %v185_v20  ;;  %v188_v24 = vld [vmem:[%s2581_s2 + $0x58] sm:$0xff]  ;;  %v270_v26 = vld [vmem:[%s2580_s1] sm:$0x3]  ;;  %vm473_vm4 = vcmask 1043456   ;;  %vm470_vm5 = vcmask 31744  }
   0x7   :  { %2070 = vmatpush3.bf16.msra.mxu1 %v2069_v12  ;;  %v2078_v25 = vpack.c.bf16 %v188_v24, %v187_v22  ;;  %272 = vrot.lane.b32.xlu0 %v270_v26, %s2242_s18  ;;  %v1717_v27 = vld [vmem:[%s2581_s2 + $0xd8] ss:$0 sm:$0xff]  ;;  %v309_v32 = vld [vmem:[%s2581_s2 + $0x60] sm:$0xff]  ;;  %v391_v51 = vld [vmem:[%s2581_s2 + $0x70] sm:$0xff]  ;;  %vm307_vm6 = vcmask 0   ;;  %vm645_vm7 = vcmask 25600  }
   0x8   :  { %2067 = vmatpush3.bf16.msra.mxu0 %v2066_v7  ;;  %2071 = vmatprep.subr.bf16.mxu1 %v2239_v3  ;;  %v1719_v33 = vld [vmem:[%s2581_s2 + $0xe0] ss:$0 sm:$0xff]  ;;  %v392_v52 = vld [vmem:[%s2581_s2 + $0x78] sm:$0xff]  ;;  %v394_v55 = vld [vmem:[%s2581_s2 + $0x88] sm:$0xff]  ;;  %vm795_vm8 = vcmask 58400   ;;  %vm945_vm9 = vcmask 91200  }
   0x9   :  { %2074 = vmatprep.subr.bf16.mxu0 %v2239_v3  ;;  %v393_v53 = vld [vmem:[%s2581_s2 + $0x80] sm:$0xff]  ;;  %v2081_v54 = vpack.c.bf16 %v392_v52, %v391_v51  ;;  %v1721_v59 = vld [vmem:[%s2581_s2 + $0xe8] ss:$0 sm:$0xff]  ;;  %v558_v12 = vld [vmem:[%s2581_s2 + $0xb0] sm:$0xff]  ;;  %s2246_s12 = smov 12   ;;  %vm1095_vm10 = vcmask 124000  }
   0xa   :  { %v2084_v56 = vpack.c.bf16 %v394_v55, %v393_v53  ;;  %v390_v63 = vld [vmem:[%s2581_s2 + $0x68] sm:$0xf]  ;;  %v559_v13 = vld [vmem:[%s2581_s2 + $0xb8] sm:$0xff]  ;;  %v556_v20 = vld [vmem:[%s2581_s2 + $0xa0] sm:$0xff]  ;;  %s2247_s15 = smov 16   ;;  %vm1245_vm11 = vcmask 156800  }
   0xb   :  { %1852 = vmatmul.mubr.msk.f32.vlgmr.msra.gmra.mrb[0].mxu0 %vm27_vm1, %v17_v8  ;;  %2073 = vmatpush3.bf16.msra.mxu1 %v2072_v14  ;;  %v554_v14 = vld [vmem:[%s2581_s2 + $0x90] sm:$0xff]  ;;  %v557_v21 = vld [vmem:[%s2581_s2 + $0xa8] sm:$0xff]  ;;  %s2248_s19 = smov 20   ;;  %vm1395_vm12 = vcmask 189600   ;;  %s2249_s1 = smov 24   ;;  %vm1545_vm13 = vcmask 222400  }
   0xc   :  { %1873 = vmatprep.mubr.msk.f32.mxu0 %vm2240_vm0, %v2241_v6  ;;  %1876 = vmatprep.subr.mxu1 %v2241_v6  ;;  %s2250_s24 = smov [#allocation2]  }
   0xd   :  { %2076 = vmatpush3.bf16.msra.mxu0 %v2075_v23  ;;  %v2416_v23 = vpack.c.bf16 %v557_v21, %v556_v20 }
   0xe   :  { %2077 = vmatprep.subr.bf16.mxu0 %v2239_v3 }
  0x11   :  { %2079 = vmatpush3.bf16.msra.mxu0 %v2078_v25 }
  0x12   :  { %2086 = vmatprep.subr.bf16.mxu0 %v2239_v3 }
  0x77   :  { %v469_v43 = vpop.permute.xlu1 %468 }
  0x79   :  { %v273_v40 = vpop.permute.xlu0 %272 }
  0xde   :  { %v97_v16 = vpop.f32.mrb[0].mxu0 }
  0xdf   :  { %v98_v17 = vadd.f32 %v1715_v15, %v97_v16  ;;  %v1853_v18 = vpop.f32.mrb[1].mxu0  ;;  %v2392_v15 = vpack.c.bf16 %v559_v13, %v558_v12  ;;  %v555_v16 = vld [vmem:[%s2581_s2 + $0x98] sm:$0xff] }
  0xe0   :  { %v561_v18 = vld [vmem:[%s2581_s2 + $0xc8] sm:$0xff] }
  0xe1   :  { %2191 = vtanh.f32 %v98_v17  ;;  %v560_v17 = vld [vmem:[%s2581_s2 + $0xc0] sm:$0xff] }
  0xe2   :  { %v2412_v22 = vpack.c.bf16 %v561_v18, %v560_v17 }
  0xeb   :  { %v2192_v19 = vpop.eup %2191 }
  0xec   :  { %1863 = vmatmul.mubr.msk.f32.vlgmr.msra.gmra.mrb[0].mxu1 %vm27_vm1, %v2192_v19  ;;  %v2403_v19 = vpack.c.bf16 %v555_v16, %v554_v14 }
  0xed   :  { %1878 = vmatprep.mubr.msk.f32.mxu1 %vm2240_vm0, %v2241_v6  ;;  %1877 = vmatpush3.msra.mxu1 %v309_v32  ;;  %v2443_v32 = vld [vmem:[%s2581_s2 + $0x100] ss:$0 sm:$0xff] }
  0xee   :  { %2080 = vmatprep.subr.bf16.mxu1 %v2239_v3 }
 0x1bf   :  { %v180_v28 = vpop.f32.mrb[0].mxu1 }
 0x1c0   :  { %v181_v29 = vadd.f32 %v1717_v27, %v180_v28  ;;  %v1864_v30 = vpop.f32.mrb[1].mxu1  ;;  %v1726_v27 = vld [vmem:[%s2581_s2 + $0xf0] ss:$0 sm:$0xff] }
 0x1c2   :  { %2193 = vtanh.f32 %v181_v29 }
 0x1cc   :  { %v2194_v31 = vpop.eup %2193 }
 0x1cd   :  { %1874 = vmatmul.mubr.msk.f32.vlgmr.msra.gmra.mrb[2].mxu0 %vm27_vm1, %v2194_v31 }
 0x1ce   :  { %1905 = vmatprep.mubr.msk.f32.mxu0 %vm2240_vm0, %v2241_v6  ;;  %2088 = vmatpush3.bf16.msra.mxu0 %v2392_v15 }
 0x1cf   :  { %2089 = vmatprep.subr.bf16.mxu0 %v2239_v3 }
 0x1d2   :  { %2091 = vmatpush3.bf16.msra.mxu0 %v2412_v22 }
 0x1d3   :  { %2098 = vmatprep.subr.bf16.mxu0 %v2239_v3 }
 0x2a0   :  { %v263_v34 = vpop.f32.mrb[2].mxu0 }
 0x2a1   :  { %v264_v35 = vadd.f32 %v1719_v33, %v263_v34  ;;  %v1875_v36 = vpop.f32.mrb[3].mxu0  ;;  %v2448_v33 = vld [vmem:[%s2581_s2 + $0xf8] ss:$0 sm:$0xff]  ;;  %s2245_s2 = smov 4  }
 0x2a3   :  { %v267_v37 = vmul.f32 0.5, %v264_v35  ;;  %v282_v38 = vmul.f32 %v264_v35, %v264_v35  ;;  %v281_v44 = vadd.f32 1.0, %v264_v35 }
 0x2a5   :  { %v268_v39 = vmul.f32 1.442695, %v267_v37  ;;  %284 = vrot.lane.b32.xlu1 %v282_v38, %s2242_s18 }
 0x2a7   :  { %2195 = vpow2.f32 %v268_v39 }
 0x2b1   :  { %v2196_v41 = vpop.eup %2195 }
 0x2b2   :  { %v275_v42 = vmul.f32 %v2196_v41, %v273_v40  ;;  %v288_v47 = vmul.f32 %v2196_v41, %v2196_v41 }
 0x2b4   :  { %277 = vrot.lane.b32.xlu0 %v275_v42, %s2244_s25 }
 0x317   :  { %v285_v45 = vpop.permute.xlu1 %284 }
 0x318   :  { %v287_v46 = vsub.f32 %v281_v44, %v285_v45 }
 0x31a   :  { %v289_v48 = vsub.f32 %v287_v46, %v288_v47 }
 0x31c   :  { %291 = vrot.lane.b32.xlu0 %v289_v48, %s2244_s25  ;;  %s1705_s25 = sshll.u32 %s2250_s24, 4  ;;  %s1706_s25 = int_to_ptr.vmem [resolvable:$true] %s1705_s25 }
 0x31d   :  { %s2215_s26 = scalar_lea.vmem %s1706_s25, 16  ;;  %s2219_s27 = scalar_lea.vmem %s1706_s25, 32 }
 0x31e   :  { %p2216_p0 = scmp.ne.s32.totalorder %s1706_s25, %s2215_s26  ;;  %p2220_p1 = scmp.lt.s32.totalorder %s1706_s25, %s1706_s25 }
 0x31f   :  { %p2221_p2 = scmp.lt.s32.totalorder %s2219_s27, %s2215_s26 }
 0x321   :  { %p2222_p3 = por %p2221_p2, %p2220_p1 }
 0x323   :  { %p2223_p4 = pnand %p2222_p3, %p2216_p0 }
 0x326   :  { %v278_v49 = vpop.permute.xlu0 %277 }
 0x327   :  { %v280_v50 = vadd.f32 %v278_v49, %v264_v35 }
 0x329   :  { %1879 = vmatmul.mubr.msk.f32.vlgmr.msra.gmra.mrb[2].mxu1 %vm315_vm2, %v280_v50 }
 0x32a   :  { %1889 = vmatprep.mubr.msk.f32.mxu1 %vm2240_vm0, %v2241_v6  ;;  %2082 = vmatpush3.bf16.msra.mxu1 %v2081_v54 }
 0x32b   :  { %2083 = vmatprep.subr.bf16.mxu1 %v2239_v3 }
 0x32e   :  { %2085 = vmatpush3.bf16.msra.mxu1 %v2084_v56 }
 0x32f   :  { %1892 = vmatprep.subr.mxu1 %v2241_v6 }
 0x38e   :  { %v292_v57 = vpop.permute.xlu0 %291 }
 0x38f   :  { %v295_v58 = vsel %vm294_vm3, %v292_v57, 0.0 }
 0x390   :  { %296 = vadd.xlane.f32.xlu1 %v295_v58 }
 0x3fc   :  { %v385_v60 = vpop.f32.mrb[2].mxu1 }
 0x3fd   :  { %v386_v61 = vadd.f32 %v1721_v59, %v385_v60  ;;  %v1880_v62 = vpop.f32.mrb[3].mxu1 }
 0x3ff   :  { %2197 = vtanh.f32 %v386_v61 }
 0x409   :  { %v2198_v0 = vpop.eup %2197 }
 0x40a   :  { %1890 = vmatmul.mubr.msk.f32.vlgmr.msra.gmra.mrb[4].mxu1 %vm27_vm1, %v2198_v0 }
 0x40b   :  { %1893 = vmatpush3.msk.msra.mxu1 %vm473_vm4, %v390_v63  ;;  %1894 = vmatprep.mubr.msk.f32.mxu1 %vm2240_vm0, %v2241_v6 }
 0x40c   :  { %2092 = vmatprep.subr.bf16.mxu1 %v2239_v3 }
 0x40e   :  { %1895 = vmatmul.mubr.msk.f32.vlgmr.msra.gmra.mrb[6].mxu1 %vm470_vm5, %v469_v43 }
 0x40f   :  { %1916 = vmatprep.mubr.msk.f32.mxu1 %vm2240_vm0, %v2241_v6  ;;  %2094 = vmatpush3.bf16.msra.mxu1 %v2403_v19 }
 0x410   :  { %2095 = vmatprep.subr.bf16.mxu1 %v2239_v3 }
 0x413   :  { %2097 = vmatpush3.bf16.msra.mxu1 %v2416_v23 }
 0x414   :  { %2104 = vmatprep.subr.bf16.mxu1 %v2239_v3 }
 0x41d   :  { %v297_v1 = vpop.xlane.xlu1 %296 }
 0x41e   :  { %v298_v2 = vrot.slane %v297_v1, 4 }
 0x420   :  { %v299_v4 = vadd.f32 %v298_v2, %v297_v1 }
 0x422   :  { %v300_v5 = vrot.slane %v299_v4, 2 }
 0x424   :  { %v301_v7 = vadd.f32 %v300_v5, %v299_v4 }
 0x426   :  { %v302_v8 = vrot.slane %v301_v7, 1 }
 0x428   :  { %v303_v9 = vadd.f32 %v302_v8, %v301_v7 }
 0x42a   :  { %2176 = vpush %v303_v9 }
 0x45b   :  { %s2177_s11 = spop %2176 }
 0x45c   :  { %v305_v10 = vstv %s2177_s11 }
 0x45d   :  { %v306_v11 = vmul.f32 -0.5, %v305_v10 }
 0x45f   :  { %308 = vst.msk [vmem:[#allocation2] sm:$0x1] %vm307_vm6, %v306_v11 }
 0x4dd   :  { %v464_v24 = vpop.f32.mrb[4].mxu1 }
 0x4de   :  { %v1891_v25 = vpop.f32.mrb[5].mxu1 }
 0x4e1   :  { %v543_v26 = vpop.f32.mrb[6].mxu1 }
 0x4e2   :  { %v544_v28 = vadd.f32 %v543_v26, %v464_v24  ;;  %v1896_v29 = vpop.f32.mrb[7].mxu1 }
 0x4e4   :  { %v552_v30 = vadd.f32 %v1726_v27, %v544_v28 }
 0x4e6   :  { %2199 = vtanh.f32 %v552_v30 }
 0x4f0   :  { %v2200_v31 = vpop.eup %2199 }
 0x4f1   :  { %1906 = vmatmul.mubr.msk.f32.vlgmr.msra.gmra.mrb[4].mxu0 %vm27_vm1, %v2200_v31  ;;  %1917 = vmatmul.mubr.msk.f32.vlgmr.msra.gmra.mrb[8].mxu1 %vm27_vm1, %v2200_v31 }
 0x4f2   :  { %2100 = vmatpush3.bf16.msra.mxu0 %v2392_v15  ;;  %2106 = vmatpush3.bf16.msra.mxu1 %v2403_v19 }
 0x4f3   :  { %2101 = vmatprep.subr.bf16.mxu0 %v2239_v3  ;;  %2107 = vmatprep.subr.bf16.mxu1 %v2239_v3 }
 0x4f4   :  { %1927 = vmatprep.mubr.msk.f32.mxu0 %vm2240_vm0, %v2241_v6  ;;  %1938 = vmatprep.mubr.msk.f32.mxu1 %vm2240_vm0, %v2241_v6 }
 0x4f6   :  { %2103 = vmatpush3.bf16.msra.mxu0 %v2412_v22  ;;  %2109 = vmatpush3.bf16.msra.mxu1 %v2416_v23 }
 0x4f7   :  { %2110 = vmatprep.subr.bf16.mxu0 %v2239_v3  ;;  %2116 = vmatprep.subr.bf16.mxu1 %v2239_v3 }
 0x5c4   :  { %v641_v34 = vpop.f32.mrb[4].mxu0  ;;  %v713_v35 = vpop.f32.mrb[8].mxu1 }
 0x5c5   :  { %v642_v36 = vadd.f32 %v2443_v32, %v641_v34  ;;  %v714_v37 = vadd.f32 %v2448_v33, %v713_v35  ;;  %v1907_v38 = vpop.f32.mrb[5].mxu0  ;;  %v1918_v39 = vpop.f32.mrb[9].mxu1 }
 0x5c7   :  { %646 = vst.msk [vmem:[%s2582_s3] sm:$0x3] %vm645_vm7, %v642_v36  ;;  %2201 = vtanh.f32 %v714_v37 }
 0x5d1   :  { %v2202_v40 = vpop.eup %2201 }
 0x5d2   :  { %1928 = vmatmul.mubr.msk.f32.vlgmr.msra.gmra.mrb[6].mxu0 %vm27_vm1, %v2202_v40  ;;  %1939 = vmatmul.mubr.msk.f32.vlgmr.msra.gmra.mrb[10].mxu1 %vm27_vm1, %v2202_v40 }
 0x5d3   :  { %2112 = vmatpush3.bf16.msra.mxu0 %v2392_v15  ;;  %2118 = vmatpush3.bf16.msra.mxu1 %v2403_v19 }
 0x5d4   :  { %2113 = vmatprep.subr.bf16.mxu0 %v2239_v3  ;;  %2119 = vmatprep.subr.bf16.mxu1 %v2239_v3 }
 0x5d5   :  { %1949 = vmatprep.mubr.msk.f32.mxu0 %vm2240_vm0, %v2241_v6  ;;  %1960 = vmatprep.mubr.msk.f32.mxu1 %vm2240_vm0, %v2241_v6 }
 0x5d7   :  { %2115 = vmatpush3.bf16.msra.mxu0 %v2412_v22  ;;  %2121 = vmatpush3.bf16.msra.mxu1 %v2416_v23 }
 0x5d8   :  { %2122 = vmatprep.subr.bf16.mxu0 %v2239_v3  ;;  %2128 = vmatprep.subr.bf16.mxu1 %v2239_v3 }
 0x6a5   :  { %v787_v41 = vpop.f32.mrb[6].mxu0  ;;  %v863_v42 = vpop.f32.mrb[10].mxu1 }
 0x6a6   :  { %v788_v43 = vadd.f32 %v2443_v32, %v787_v41  ;;  %v864_v44 = vadd.f32 %v2448_v33, %v863_v42  ;;  %v1929_v45 = vpop.f32.mrb[7].mxu0  ;;  %v1940_v46 = vpop.f32.mrb[11].mxu1 }
 0x6a8   :  { %2203 = vtanh.f32 %v864_v44  ;;  %792 = vrot.lane.b32.xlu0 %v788_v43, %s2245_s2 }
 0x6b2   :  { %v2204_v47 = vpop.eup %2203 }
 0x6b3   :  { %1950 = vmatmul.mubr.msk.f32.vlgmr.msra.gmra.mrb[8].mxu0 %vm27_vm1, %v2204_v47  ;;  %1961 = vmatmul.mubr.msk.f32.vlgmr.msra.gmra.mrb[12].mxu1 %vm27_vm1, %v2204_v47 }
 0x6b4   :  { %2124 = vmatpush3.bf16.msra.mxu0 %v2392_v15  ;;  %2130 = vmatpush3.bf16.msra.mxu1 %v2403_v19 }
 0x6b5   :  { %2125 = vmatprep.subr.bf16.mxu0 %v2239_v3  ;;  %2131 = vmatprep.subr.bf16.mxu1 %v2239_v3 }
 0x6b6   :  { %1971 = vmatprep.mubr.msk.f32.mxu0 %vm2240_vm0, %v2241_v6  ;;  %1982 = vmatprep.mubr.msk.f32.mxu1 %vm2240_vm0, %v2241_v6 }
 0x6b8   :  { %2127 = vmatpush3.bf16.msra.mxu0 %v2412_v22  ;;  %2133 = vmatpush3.bf16.msra.mxu1 %v2416_v23 }
 0x6b9   :  { %2134 = vmatprep.subr.bf16.mxu0 %v2239_v3  ;;  %2140 = vmatprep.subr.bf16.mxu1 %v2239_v3 }
 0x71a   :  { %v793_v48 = vpop.permute.xlu0 %792 }
 0x71b   :  { %796 = vst.msk [vmem:[%s2582_s3] sm:$0x3] %vm795_vm8, %v793_v48 }
 0x786   :  { %v937_v49 = vpop.f32.mrb[8].mxu0  ;;  %v1013_v50 = vpop.f32.mrb[12].mxu1 }
 0x787   :  { %v938_v51 = vadd.f32 %v2443_v32, %v937_v49  ;;  %v1014_v52 = vadd.f32 %v2448_v33, %v1013_v50  ;;  %v1951_v53 = vpop.f32.mrb[9].mxu0  ;;  %v1962_v54 = vpop.f32.mrb[13].mxu1 }
 0x789   :  { %2205 = vtanh.f32 %v1014_v52  ;;  %942 = vrot.lane.b32.xlu0 %v938_v51, %s2242_s18 }
 0x793   :  { %v2206_v55 = vpop.eup %2205 }
 0x794   :  { %1972 = vmatmul.mubr.msk.f32.vlgmr.msra.gmra.mrb[10].mxu0 %vm27_vm1, %v2206_v55  ;;  %1983 = vmatmul.mubr.msk.f32.vlgmr.msra.gmra.mrb[14].mxu1 %vm27_vm1, %v2206_v55 }
 0x795   :  { %2136 = vmatpush3.bf16.msra.mxu0 %v2392_v15  ;;  %2142 = vmatpush3.bf16.msra.mxu1 %v2403_v19 }
 0x796   :  { %2137 = vmatprep.subr.bf16.mxu0 %v2239_v3  ;;  %2143 = vmatprep.subr.bf16.mxu1 %v2239_v3 }
 0x797   :  { %1993 = vmatprep.mubr.msk.f32.mxu0 %vm2240_vm0, %v2241_v6  ;;  %2004 = vmatprep.mubr.msk.f32.mxu1 %vm2240_vm0, %v2241_v6 }
 0x799   :  { %2139 = vmatpush3.bf16.msra.mxu0 %v2412_v22  ;;  %2145 = vmatpush3.bf16.msra.mxu1 %v2416_v23 }
 0x79a   :  { %2146 = vmatprep.subr.bf16.mxu0 %v2239_v3  ;;  %2152 = vmatprep.subr.bf16.mxu1 %v2239_v3 }
 0x7fb   :  { %v943_v56 = vpop.permute.xlu0 %942 }
 0x7fc   :  { %946 = vst.msk [vmem:[%s2582_s3] sm:$0x3] %vm945_vm9, %v943_v56 }
 0x867   :  { %v1087_v57 = vpop.f32.mrb[10].mxu0  ;;  %v1163_v58 = vpop.f32.mrb[14].mxu1 }
 0x868   :  { %v1088_v59 = vadd.f32 %v2443_v32, %v1087_v57  ;;  %v1164_v60 = vadd.f32 %v2448_v33, %v1163_v58  ;;  %v1973_v61 = vpop.f32.mrb[11].mxu0  ;;  %v1984_v62 = vpop.f32.mrb[15].mxu1 }
 0x86a   :  { %2207 = vtanh.f32 %v1164_v60  ;;  %1092 = vrot.lane.b32.xlu0 %v1088_v59, %s2246_s12 }
 0x874   :  { %v2208_v63 = vpop.eup %2207 }
 0x875   :  { %1994 = vmatmul.mubr.msk.f32.vlgmr.msra.gmra.mrb[12].mxu0 %vm27_vm1, %v2208_v63  ;;  %2005 = vmatmul.mubr.msk.f32.vlgmr.msra.gmra.mrb[16].mxu1 %vm27_vm1, %v2208_v63 }
 0x876   :  { %2148 = vmatpush3.bf16.msra.mxu0 %v2392_v15  ;;  %2154 = vmatpush3.bf16.msra.mxu1 %v2403_v19 }
 0x877   :  { %2149 = vmatprep.subr.bf16.mxu0 %v2239_v3  ;;  %2155 = vmatprep.subr.bf16.mxu1 %v2239_v3 }
 0x878   :  { %2015 = vmatprep.mubr.msk.f32.mxu0 %vm2240_vm0, %v2241_v6  ;;  %2026 = vmatprep.mubr.msk.f32.mxu1 %vm2240_vm0, %v2241_v6 }
 0x87a   :  { %2151 = vmatpush3.bf16.msra.mxu0 %v2412_v22  ;;  %2157 = vmatpush3.bf16.msra.mxu1 %v2416_v23 }
 0x87b   :  { %2158 = vmatprep.subr.bf16.mxu0 %v2239_v3  ;;  %2164 = vmatprep.subr.bf16.mxu1 %v2239_v3 }
 0x8dc   :  { %v1093_v0 = vpop.permute.xlu0 %1092 }
 0x8dd   :  { %1096 = vst.msk [vmem:[%s2582_s3] sm:$0x3] %vm1095_vm10, %v1093_v0 }
 0x948   :  { %v1237_v1 = vpop.f32.mrb[12].mxu0  ;;  %v1313_v2 = vpop.f32.mrb[16].mxu1 }
 0x949   :  { %v1238_v4 = vadd.f32 %v2443_v32, %v1237_v1  ;;  %v1314_v5 = vadd.f32 %v2448_v33, %v1313_v2  ;;  %v1995_v7 = vpop.f32.mrb[13].mxu0  ;;  %v2006_v8 = vpop.f32.mrb[17].mxu1 }
 0x94b   :  { %2209 = vtanh.f32 %v1314_v5  ;;  %1242 = vrot.lane.b32.xlu0 %v1238_v4, %s2247_s15 }
 0x955   :  { %v2210_v9 = vpop.eup %2209 }
 0x956   :  { %2016 = vmatmul.mubr.msk.f32.vlgmr.msra.gmra.mrb[14].mxu0 %vm27_vm1, %v2210_v9  ;;  %2027 = vmatmul.mubr.msk.f32.vlgmr.msra.gmra.mrb[18].mxu1 %vm27_vm1, %v2210_v9 }
 0x957   :  { %2160 = vmatpush3.bf16.msra.mxu0 %v2392_v15  ;;  %2166 = vmatpush3.bf16.msra.mxu1 %v2403_v19 }
 0x958   :  { %2161 = vmatprep.subr.bf16.mxu0 %v2239_v3  ;;  %2167 = vmatprep.subr.bf16.mxu1 %v2239_v3 }
 0x959   :  { %2037 = vmatprep.mubr.msk.f32.mxu0 %vm2240_vm0, %v2241_v6  ;;  %2048 = vmatprep.mubr.msk.f32.mxu1 %vm2240_vm0, %v2241_v6 }
 0x95b   :  { %2163 = vmatpush3.bf16.msra.mxu0 %v2412_v22  ;;  %2169 = vmatpush3.bf16.msra.mxu1 %v2416_v23 }
 0x95c   :  { %2170 = vmatprep.subr.bf16.mxu0 %v2239_v3 }
 0x9bd   :  { %v1243_v10 = vpop.permute.xlu0 %1242 }
 0x9be   :  { %1246 = vst.msk [vmem:[%s2582_s3] sm:$0x3] %vm1245_vm11, %v1243_v10 }
 0xa29   :  { %v1387_v11 = vpop.f32.mrb[14].mxu0  ;;  %v1463_v12 = vpop.f32.mrb[18].mxu1 }
 0xa2a   :  { %v1388_v13 = vadd.f32 %v2443_v32, %v1387_v11  ;;  %v1464_v14 = vadd.f32 %v2448_v33, %v1463_v12  ;;  %v2017_v16 = vpop.f32.mrb[15].mxu0  ;;  %v2028_v17 = vpop.f32.mrb[19].mxu1 }
 0xa2c   :  { %2211 = vtanh.f32 %v1464_v14  ;;  %1392 = vrot.lane.b32.xlu0 %v1388_v13, %s2248_s19 }
 0xa36   :  { %v2212_v18 = vpop.eup %2211 }
 0xa37   :  { %2038 = vmatmul.mubr.msk.f32.vlgmr.msra.gmra.mrb[16].mxu0 %vm27_vm1, %v2212_v18  ;;  %2049 = vmatmul.mubr.msk.f32.vlgmr.msra.gmra.mrb[20].mxu1 %vm27_vm1, %v2212_v18 }
 0xa38   :  { %2172 = vmatpush3.bf16.msra.mxu0 %v2392_v15  ;;  %2059 = vmatprep.mubr.msk.f32.mxu0 %vm2240_vm0, %v2241_v6 }
 0xa39   :  { %2173 = vmatprep.subr.bf16.mxu0 %v2239_v3 }
 0xa3c   :  { %2175 = vmatpush3.bf16.msra.mxu0 %v2412_v22 }
 0xa9e   :  { %v1393_v19 = vpop.permute.xlu0 %1392 }
 0xa9f   :  { %1396 = vst.msk [vmem:[%s2582_s3] sm:$0x3] %vm1395_vm12, %v1393_v19 }
 0xb0a   :  { %v1537_v20 = vpop.f32.mrb[16].mxu0  ;;  %v1613_v21 = vpop.f32.mrb[20].mxu1 }
 0xb0b   :  { %v1538_v23 = vadd.f32 %v2443_v32, %v1537_v20  ;;  %v1614_v24 = vadd.f32 %v2448_v33, %v1613_v21  ;;  %v2039_v15 = vpop.f32.mrb[17].mxu0  ;;  %v2050_v25 = vpop.f32.mrb[21].mxu1 }
 0xb0d   :  { %2213 = vtanh.f32 %v1614_v24  ;;  %1542 = vrot.lane.b32.xlu0 %v1538_v23, %s2249_s1 }
 0xb17   :  { %v2214_v3 = vpop.eup %2213 }
 0xb18   :  { %2060 = vmatmul.mubr.msk.f32.vlgmr.msra.gmra.mrb[18].mxu0 %vm27_vm1, %v2214_v3 }
 0xb7f   :  { %v1543_v6 = vpop.permute.xlu0 %1542 }
 0xb80   :  { %1546 = vst.msk [vmem:[%s2582_s3] sm:$0x3] %vm1545_vm13, %v1543_v6 }
 0xb81   :  { %2226 = shalt.err (!%p2223_p4)
}
 0xb82   :  { %s2227_s30 = scalar_lea.hbm %s2583_s4, 16 }
 0xb83   :  { %p2228_p5 = scmp.ne.s32.totalorder %s2583_s4, %s2227_s30  ;;  %p2231_p6 = scmp.lt.u32.totalorder %s2227_s30, %s2583_s4 }
 0xb85   :  { %p2233_p7 = pnand %p2231_p6, %p2228_p5 }
 0xb87   :  { %2236 = shalt.err (!%p2233_p7)
}
 0xb88   :  { %1708 = dma.vmem_to_hbm [thread:$0]  %s1706_s25, 16, %s2583_s4, [#allocation3]   ;;  %vm1695_vm14 = vcmask 255200  }
 0xb89   :  { %s2251_s9 = smov 28  }
 0xbeb   :  { %v1687_v22 = vpop.f32.mrb[18].mxu0 }
 0xbec   :  { %v1688_v26 = vadd.f32 %v2443_v32, %v1687_v22  ;;  %v2061_v27 = vpop.f32.mrb[19].mxu0 }
 0xbee   :  { %1692 = vrot.lane.b32.xlu0 %v1688_v26, %s2251_s9 }
 0xc60   :  { %v1693_v28 = vpop.permute.xlu0 %1692 }
 0xc61   :  { %1696 = vst.msk [vmem:[%s2582_s3] sm:$0x3] %vm1695_vm14, %v1693_v28 }
 0xc62   :  { %2237 = dma.done.wait [#allocation3], 16  }
 0xc63   :  { %2238 = vsyncadd [#allocation3], 4294967280 }
 0xc64   :  { %1714 = vsyncpa [#allocation3], 1 }

</bundles_post_ra>
